<compile_context>
chip_gen: v5e
topology: v5e:2x2
jax: 0.10.0
libtpu: 0.0.40
codegen_flags: <defaults>
</compile_context>

<pallas_src>
import functools

import jax
import jax.numpy as jnp
from jax.experimental import pallas as pl
from jax.experimental.pallas import tpu as pltpu


def _fuse_concat_kernel(xs_ref, xf_ref, w_ref, b_ref, o_ref):
    # xs_ref: (C_s*T_out, hw_blk)          slow pathway slab (pass-through copy)
    # xf_ref: (C_f*T_f,  hw_blk)           fast pathway slab (f32; cast at MXU input)
    # w_ref:  (C_out*T_out, C_f*T_f)       banded conv weight, BN scale folded, bf16
    # b_ref:  (C_out*T_out, 1)             folded BN bias, f32
    # o_ref:  ((C_s+C_out)*T_out, hw_blk)  concat([x_s, relu(bn(conv(x_f)))]) slab
    m_slow = xs_ref.shape[0]
    # Slow rows: straight copy (fuses the downstream torch.cat into this store).
    o_ref[:m_slow, :] = xs_ref[...].astype(o_ref.dtype)
    # Fast->slow fusion: banded matmul on the MXU, f32 accumulate, f32 epilogue.
    y = jnp.dot(w_ref[...], xf_ref[...].astype(w_ref.dtype),
                preferred_element_type=jnp.float32)
    y = y + b_ref[...]
    o_ref[m_slow:, :] = jnp.maximum(y, 0.0).astype(o_ref.dtype)


def _pick_hw_block(hw_pad, per_lane_stream_bytes, resident_bytes,
                   vmem_budget_bytes, max_block_lanes=4096):
    """Largest multiple-of-128 divisor of hw_pad whose double-buffered working
    set (plus the resident weight/bias) fits inside the VMEM budget."""
    n128 = hw_pad // 128
    for d in range(min(n128, max_block_lanes // 128), 0, -1):
        if n128 % d:
            continue
        hw_blk = d * 128
        if resident_bytes + hw_blk * per_lane_stream_bytes <= vmem_budget_bytes:
            return hw_blk
    return 128


def fuse_fast_to_slow(x_s, x_f, weight, bn_gamma, bn_beta, bn_mean, bn_var, *,
                      fusion_kernel, alpha, eps=1e-5, hw_block=None,
                      compute_dtype=jnp.bfloat16, out_dtype=None,
                      vmem_budget_bytes=32 << 20):
    """
    x_s: (N, C_s, T_s, H, W)   slow pathway
    x_f: (N, C_f, T_f, H, W)   fast pathway
    weight: (C_out, C_f, fusion_kernel, 1, 1)  Conv3d weight (no bias)
    bn_*: (C_out,)             BatchNorm3d params / running stats (eval mode)
    Returns [x_s_fuse, x_f] with x_s_fuse = concat([x_s, relu(bn(conv(x_f)))], 1)
    """
    N, C_f, T_f, H, W = x_f.shape
    Nb, C_s, T_s, Hs, Ws = x_s.shape
    assert (Nb, Hs, Ws) == (N, H, W)
    C_out = weight.shape[0]
    k = fusion_kernel
    pad = k // 2
    T_out = (T_f + 2 * pad - k) // alpha + 1
    # Channel-concat requires matching temporal extents (holds when alpha | T_f).
    assert T_s == T_out, "slow-pathway temporal length must equal fused T_out"

    HW = H * W
    K = C_f * T_f              # contraction size
    M_fuse = C_out * T_out     # fused rows per batch
    M_slow = C_s * T_out       # pass-through (slow) rows per batch
    M_total = M_slow + M_fuse

    # Pass bf16 here when the surrounding model runs bf16 (halves the output
    # HBM stream); default keeps the slow-pathway dtype so semantics match.
    if out_dtype is None:
        out_dtype = x_s.dtype

    # ---- lane padding: keep the store path dense for ragged H*W -------------
    HW_pad = pl.cdiv(HW, 128) * 128

    # ---- VMEM-budget-aware spatial slab --------------------------------------
    xf_bytes = jnp.dtype(x_f.dtype).itemsize
    xs_bytes = jnp.dtype(x_s.dtype).itemsize
    o_bytes = jnp.dtype(out_dtype).itemsize
    w_bytes = jnp.dtype(compute_dtype).itemsize
    # Resident weight/bias are double-buffered by the default pipeline.
    # NOTE: pipeline_mode=pl.Buffered(1) on these grid-invariant operands would
    # halve that footprint; at demo scale it is noise (32 KiB), keep default.
    resident = 2 * (M_fuse * K * w_bytes + M_fuse * 4)
    per_lane = 2 * (K * xf_bytes + M_slow * xs_bytes + M_total * o_bytes)
    if hw_block is None:
        hw_block = _pick_hw_block(HW_pad, per_lane, resident, vmem_budget_bytes)
    assert HW_pad % hw_block == 0 and hw_block % 128 == 0

    # ---- one-time glue: banded weight with BN scale folded in ---------------
    w3 = weight.reshape(C_out, C_f, k).astype(jnp.float32)
    inv_std = jax.lax.rsqrt(bn_var.astype(jnp.float32) + eps)
    scale = bn_gamma.astype(jnp.float32) * inv_std                      # (C_out,)
    bias = bn_beta.astype(jnp.float32) - bn_mean.astype(jnp.float32) * scale

    t_out_idx = jnp.arange(T_out)[:, None]                              # (T_out, 1)
    tau = jnp.arange(T_f)[None, :]                                      # (1, T_f)
    j = tau - t_out_idx * alpha + pad                                   # (T_out, T_f)
    valid = (j >= 0) & (j < k)
    j_safe = jnp.clip(j, 0, k - 1)
    band = jnp.take(w3, j_safe.reshape(-1), axis=2).reshape(C_out, C_f, T_out, T_f)
    band = jnp.where(valid[None, None, :, :], band, 0.0)
    band = band * scale[:, None, None, None]                            # fold BN scale
    big_w = jnp.transpose(band, (0, 2, 1, 3)).reshape(M_fuse, K).astype(compute_dtype)
    bias_rows = jnp.repeat(bias, T_out)[:, None]                        # (M_fuse,1) f32

    # ---- activations: free reshapes only (no cast pass, no copy) ------------
    xf_flat = x_f.reshape(N, K, HW)
    xs_flat = x_s.reshape(N, M_slow, HW)
    if HW_pad != HW:
        xf_flat = jnp.pad(xf_flat, ((0, 0), (0, 0), (0, HW_pad - HW)))
        xs_flat = jnp.pad(xs_flat, ((0, 0), (0, 0), (0, HW_pad - HW)))

    grid = (N, HW_pad // hw_block)
    cost = pl.CostEstimate(
        flops=2 * N * M_fuse * K * HW_pad,
        transcendentals=0,
        bytes_accessed=(N * K * HW_pad * xf_bytes
                        + N * M_slow * HW_pad * xs_bytes
                        + M_fuse * K * w_bytes
                        + N * M_total * HW_pad * o_bytes))

    out_flat = pl.pallas_call(
        _fuse_concat_kernel,
        out_shape=jax.ShapeDtypeStruct((N, M_total, HW_pad), out_dtype),
        grid_spec=pltpu.PrefetchScalarGridSpec(
            num_scalar_prefetch=0,
            grid=grid,
            in_specs=[
                pl.BlockSpec((pl.Squeezed(), M_slow, hw_block),
                             lambda n, s: (n, 0, s)),
                pl.BlockSpec((pl.Squeezed(), K, hw_block),
                             lambda n, s: (n, 0, s)),
                pl.BlockSpec((M_fuse, K), lambda n, s: (0, 0)),   # resident weight
                pl.BlockSpec((M_fuse, 1), lambda n, s: (0, 0)),   # resident bias
            ],
            out_specs=pl.BlockSpec((pl.Squeezed(), M_total, hw_block),
                                   lambda n, s: (n, 0, s)),
        ),
        compiler_params=pltpu.CompilerParams(
            dimension_semantics=("parallel", "parallel"),
            vmem_limit_bytes=int(min(64 << 20, vmem_budget_bytes + (8 << 20)))),
        cost_estimate=cost,
    )(xs_flat, xf_flat, big_w, bias_rows)

    # ---- glue: free reshape back to NCTHW (concat already done in-kernel) ----
    if HW_pad != HW:
        out_flat = out_flat[..., :HW]
    x_s_fuse = out_flat.reshape(N, C_s + C_out, T_out, H, W)
    return [x_s_fuse, x_f]


def _reference(x_s, x_f, weight, bn_gamma, bn_beta, bn_mean, bn_var,
               *, fusion_kernel, alpha, eps=1e-5):
    """Pure-JAX f32 reference (same math, for verification)."""
    N, C_f, T_f, H, W = x_f.shape
    k = fusion_kernel
    pad = k // 2
    T_out = (T_f + 2 * pad - k) // alpha + 1
    x_pad = jnp.pad(x_f, ((0, 0), (0, 0), (pad, pad), (0, 0), (0, 0)))
    t_idx = (jnp.arange(T_out) * alpha)[:, None] + jnp.arange(k)[None, :]
    patches = jnp.take(x_pad, t_idx.reshape(-1), axis=2).reshape(
        N, C_f, T_out, k, H, W)
    conv = jnp.einsum("nctjhw,ocj->nothw", patches,
                      weight.reshape(weight.shape[0], C_f, k))
    inv_std = 1.0 / jnp.sqrt(bn_var + eps)
    bn = (conv - bn_mean[None, :, None, None, None]) * inv_std[None, :, None, None, None]
    bn = bn * bn_gamma[None, :, None, None, None] + bn_beta[None, :, None, None, None]
    fuse = jnp.maximum(bn, 0.0)
    return [jnp.concatenate([x_s, fuse], axis=1), x_f]


if __name__ == "__main__":
    # Module hyperparameters (small, consistent with SlowFast usage).
    dim_in = 4                       # fast pathway channels
    fusion_conv_channel_ratio = 2    # C_out = 8
    fusion_kernel = 5
    alpha = 4
    eps = 1e-5

    N, H, W = 2, 16, 16              # HW = 256 -> one lane-dense 256-wide slab
    T_f = 32
    T_s = T_f // alpha               # 8
    C_s = 16                         # slow pathway channels
    C_out = dim_in * fusion_conv_channel_ratio

    key = jax.random.PRNGKey(0)
    k1, k2, k3, k4, k5, k6, k7 = jax.random.split(key, 7)

    x_s = jax.random.normal(k1, (N, C_s, T_s, H, W), dtype=jnp.float32)
    x_f = jax.random.normal(k2, (N, dim_in, T_f, H, W), dtype=jnp.float32)

    # Deterministic synthetic parameters (eval-mode BN running stats).
    weight = 0.1 * jax.random.normal(
        k3, (C_out, dim_in, fusion_kernel, 1, 1), dtype=jnp.float32)
    bn_gamma = 1.0 + 0.05 * jax.random.normal(k4, (C_out,), dtype=jnp.float32)
    bn_beta = 0.05 * jax.random.normal(k5, (C_out,), dtype=jnp.float32)
    bn_mean = 0.1 * jax.random.normal(k6, (C_out,), dtype=jnp.float32)
    bn_var = jnp.abs(0.5 + 0.1 * jax.random.normal(k7, (C_out,), dtype=jnp.float32))

    # No hw_block override: the wrapper picks the largest VMEM-safe lane slab.
    fn = jax.jit(functools.partial(
        fuse_fast_to_slow, fusion_kernel=fusion_kernel, alpha=alpha, eps=eps))
    out = fn(x_s, x_f, weight, bn_gamma, bn_beta, bn_mean, bn_var)
    jax.block_until_ready(out)

    ref = _reference(x_s, x_f, weight, bn_gamma, bn_beta, bn_mean, bn_var,
                     fusion_kernel=fusion_kernel, alpha=alpha, eps=eps)

    T_out = (T_f + 2 * (fusion_kernel // 2) - fusion_kernel) // alpha + 1
    assert out[0].shape == (N, C_s + C_out, T_out, H, W)
    assert out[1].shape == x_f.shape
    # Slow rows are an exact pass-through copy; fused rows use bf16 MXU inputs
    # with f32 accumulation -> relaxed tolerance vs the f32 reference.
    assert jnp.allclose(out[0][:, :C_s], ref[0][:, :C_s])
    assert jnp.allclose(out[0], ref[0], atol=2e-2, rtol=2e-2)
    assert jnp.allclose(out[1], x_f)

    print("KERNEL_OK")
</pallas_src>

<mosaic_0001>
module attributes {stable_mosaic.version = 11 : i64} {
  func.func @_fuse_concat_kernel(%arg0: i32, %arg1: i32, %arg2: memref<1x128x256xf32, #tpu.memory_space<vmem>>, %arg3: memref<1x128x256xf32, #tpu.memory_space<vmem>>, %arg4: memref<64x128xbf16, #tpu.memory_space<vmem>>, %arg5: memref<64x1xf32, #tpu.memory_space<vmem>>, %arg6: memref<1x192x256xf32, #tpu.memory_space<vmem>>) attributes {dimension_semantics = [#tpu.dimension_semantics<parallel>, #tpu.dimension_semantics<parallel>], iteration_bounds = array<i64: 2, 1>, scalar_prefetch = 0 : i64, scratch_operands = 0 : i64, tpu.core_type = #tpu.core_type<tc>, window_params = [{transform_indices = @transform_0, window_bounds = array<i64: 1, 128, 256>}, {transform_indices = @transform_1, window_bounds = array<i64: 1, 128, 256>}, {pipeline_mode = #tpu.pipeline_mode<synchronous>, transform_indices = @transform_2, window_bounds = array<i64: 64, 128>}, {pipeline_mode = #tpu.pipeline_mode<synchronous>, transform_indices = @transform_3, window_bounds = array<i64: 64, 1>}, {transform_indices = @transform_4, window_bounds = array<i64: 1, 192, 256>}]} {
    %c0 = arith.constant 0 : index
    %c0_0 = arith.constant 0 : index
    %c0_1 = arith.constant 0 : index
    %0 = vector.load %arg2[%c0, %c0_0, %c0_1] : memref<1x128x256xf32, #tpu.memory_space<vmem>>, vector<1x128x256xf32>
    %1 = vector.shape_cast %0 : vector<1x128x256xf32> to vector<128x256xf32>
    %c0_2 = arith.constant 0 : index
    %c0_3 = arith.constant 0 : index
    %c0_4 = arith.constant 0 : index
    %2 = vector.load %arg6[%c0_2, %c0_3, %c0_4] : memref<1x192x256xf32, #tpu.memory_space<vmem>>, vector<1x128x256xf32>
    %3 = vector.shape_cast %2 : vector<1x128x256xf32> to vector<128x256xf32>
    %4 = vector.shape_cast %1 : vector<128x256xf32> to vector<1x128x256xf32>
    tpu.vector_store %arg6[%c0_2, %c0_3, %c0_4], %4 {strides = array<i32>} : memref<1x192x256xf32, #tpu.memory_space<vmem>>, vector<1x128x256xf32>,
    %c0_5 = arith.constant 0 : index
    %c0_6 = arith.constant 0 : index
    %5 = vector.load %arg4[%c0_5, %c0_6] : memref<64x128xbf16, #tpu.memory_space<vmem>>, vector<64x128xbf16>
    %c0_7 = arith.constant 0 : index
    %c0_8 = arith.constant 0 : index
    %c0_9 = arith.constant 0 : index
    %6 = vector.load %arg3[%c0_7, %c0_8, %c0_9] : memref<1x128x256xf32, #tpu.memory_space<vmem>>, vector<1x128x256xf32>
    %7 = vector.shape_cast %6 : vector<1x128x256xf32> to vector<128x256xf32>
    %8 = arith.truncf %7 : vector<128x256xf32> to vector<128x256xbf16>
    %cst = arith.constant dense<0.000000e+00> : vector<64x256xf32>
    %9 = tpu.matmul %5, %8, %cst {dimension_numbers = #tpu.dot_dimension_numbers<[1], [0], [0], [1], [0, 0, 1, 1], [], []>} : vector<64x128xbf16>, vector<128x256xbf16>, vector<64x256xf32> -> vector<64x256xf32>
    %c0_10 = arith.constant 0 : index
    %c0_11 = arith.constant 0 : index
    %10 = vector.load %arg5[%c0_10, %c0_11] : memref<64x1xf32, #tpu.memory_space<vmem>>, vector<64x1xf32>
    %11 = vector.broadcast %10 : vector<64x1xf32> to vector<64x256xf32>
    %12 = arith.addf %9, %11 : vector<64x256xf32>
    %cst_12 = arith.constant 0.000000e+00 : f32
    %13 = vector.broadcast %cst_12 : f32 to vector<64x256xf32>
    %14 = arith.maximumf %12, %13 : vector<64x256xf32>
    %c0_13 = arith.constant 0 : index
    %c128 = arith.constant 128 : index
    %c0_14 = arith.constant 0 : index
    %15 = vector.load %arg6[%c0_13, %c128, %c0_14] : memref<1x192x256xf32, #tpu.memory_space<vmem>>, vector<1x64x256xf32>
    %16 = vector.shape_cast %15 : vector<1x64x256xf32> to vector<64x256xf32>
    %17 = vector.shape_cast %14 : vector<64x256xf32> to vector<1x64x256xf32>
    tpu.vector_store %arg6[%c0_13, %c128, %c0_14], %17 {strides = array<i32>} : memref<1x192x256xf32, #tpu.memory_space<vmem>>, vector<1x64x256xf32>,
    return
  }
  func.func @transform_0(%arg0: i32, %arg1: i32) -> (i32, i32, i32) {
    %c0_i32 = arith.constant 0 : i32
    %c0_i32_0 = arith.constant 0 : i32
    return %arg0, %c0_i32, %arg1 : i32, i32, i32
  }
  func.func @transform_1(%arg0: i32, %arg1: i32) -> (i32, i32, i32) {
    %c0_i32 = arith.constant 0 : i32
    %c0_i32_0 = arith.constant 0 : i32
    return %arg0, %c0_i32, %arg1 : i32, i32, i32
  }
  func.func @transform_2(%arg0: i32, %arg1: i32) -> (i32, i32) {
    %c0_i32 = arith.constant 0 : i32
    %c0_i32_0 = arith.constant 0 : i32
    %c0_i32_1 = arith.constant 0 : i32
    return %c0_i32, %c0_i32_0 : i32, i32
  }
  func.func @transform_3(%arg0: i32, %arg1: i32) -> (i32, i32) {
    %c0_i32 = arith.constant 0 : i32
    %c0_i32_0 = arith.constant 0 : i32
    %c0_i32_1 = arith.constant 0 : i32
    return %c0_i32, %c0_i32_0 : i32, i32
  }
  func.func @transform_4(%arg0: i32, %arg1: i32) -> (i32, i32, i32) {
    %c0_i32 = arith.constant 0 : i32
    %c0_i32_0 = arith.constant 0 : i32
    return %arg0, %c0_i32, %arg1 : i32, i32, i32
  }
}

</mosaic_0001>

<bundles_post_ra>
// kernel: fuse_fast_to_slow.1
= control target key start
LH: loop header
LB: loop body
LE: loop exit
PB: predicated region body
PF: predicated region fallthrough
CT: control target
= control target key end

     0   :  { %s789_s15 = smov 0   ;;  %s791_s16 = smov 0   ;;  %s979_s0 = inlined_call_operand.vmem [shape: f32[2,128,256], index: 0, kind: input, shape index: {}]   ;;  %s980_s1 = inlined_call_operand.vmem [shape: f32[2,128,256], index: 1, kind: input, shape index: {}]   ;;  %s981_s2 = inlined_call_operand.vmem [shape: bf16[64,128], index: 2, kind: input, shape index: {}]   ;;  %s982_s3 = inlined_call_operand.vmem [shape: f32[64,1], index: 3, kind: input, shape index: {}]   ;;  %s983_s4 = inlined_call_operand.vmem [shape: f32[2,192,256], index: 4, kind: output, shape index: {}]  }
   0x1   :  { %s793_s17 = smov 0  }
   0x2 LB: > { %s26_s18 = sadd.s32 1, %s757_s16  ;;  %p664_p0 = scmp.ge.s32.totalorder %s761_s17, 1  ;;  %s761_s17 = sphi %s793_s17, %s14_s17   ;;  %s757_s16 = sphi %s791_s16, %s985_s16   ;;  %s753_s15 = sphi %s789_s15, %s984_s15  }
   0x3   : > { %p28_p1 = scmp.ge.s32.totalorder %s26_s18, 2  ;;  %p200_p2 = scmp.lt.s32.totalorder %s761_s17, 3 }
   0x5   : > { %s987_s18 = smov (%p28_p1, %s26_s18), 0  ;;  %p201_p3 = pnand %p664_p0, %p200_p2 }
   0x6   : > { %p244_p4 = scmp.lt.s32.totalorder (!%p201_p3), %s753_s15, 1 }
   0x7   : > { %204 = sbr.rel (%p201_p3) target bundleno = 216 (0xd8), region = 36 }
   0xc   : > { %s989_s15 = smov (!%p244_p4, %s753_s15), 1  ;;  %v763_v35 = vmov 0   ;;  %v395_v49 = vld [vmem:[%s982_s3 + $0x10] sm:$0xff]  ;;  %v393_v50 = vld [vmem:[%s982_s3] sm:$0xff] }
   0xd   : > { %s688_s19 = sshll.u32 %s989_s15, 8  ;;  %s710_s20 = smul.u32 384, %s989_s15  ;;  %737 = vset.pattern.permute.xlu1 %v763_v35  ;;  %736 = vset.pattern.permute.xlu0 %v763_v35 }
   0xe   : > { %s810_s23 = scalar_lea.vmem %s979_s0, %s688_s19  ;;  %s835_s29 = scalar_lea.vmem %s980_s1, %s688_s19  ;;  %738 = vset.pattern.permute.xlu2 %v763_v35  ;;  %413 = vperm.xlu1 %737, %v395_v49  }
   0xf   : > { %s815_s26 = scalar_lea.vmem %s983_s4, %s710_s20  ;;  %v273_v0 = vld [vmem:[%s810_s23] sm:$0xff]  ;;  %v274_v1 = vld [vmem:[%s810_s23 + $0x8] sm:$0xff]  ;;  %v275_v2 = vld [vmem:[%s810_s23 + $0x10] sm:$0xff]  ;;  %403 = vperm.xlu0 %736, %v393_v50  }
  0x10   : > { %v276_v3 = vld [vmem:[%s810_s23 + $0x18] sm:$0xff]  ;;  %305 = vst [vmem:[%s815_s26] sm:$0xff] %v273_v0  ;;  %v277_v4 = vld [vmem:[%s810_s23 + $0x20] sm:$0xff]  ;;  %v278_v5 = vld [vmem:[%s810_s23 + $0x28] sm:$0xff] }
  0x11   : > { %306 = vst [vmem:[%s815_s26 + $0x8] sm:$0xff] %v274_v1  ;;  %v279_v6 = vld [vmem:[%s810_s23 + $0x30] sm:$0xff]  ;;  %v280_v7 = vld [vmem:[%s810_s23 + $0x38] sm:$0xff]  ;;  %v281_v8 = vld [vmem:[%s810_s23 + $0x40] sm:$0xff] }
  0x12   : > { %307 = vst [vmem:[%s815_s26 + $0x10] sm:$0xff] %v275_v2  ;;  %v282_v9 = vld [vmem:[%s810_s23 + $0x48] sm:$0xff]  ;;  %v283_v10 = vld [vmem:[%s810_s23 + $0x50] sm:$0xff]  ;;  %v284_v11 = vld [vmem:[%s810_s23 + $0x58] sm:$0xff] }
  0x13   : > { %308 = vst [vmem:[%s815_s26 + $0x18] sm:$0xff] %v276_v3  ;;  %v285_v12 = vld [vmem:[%s810_s23 + $0x60] sm:$0xff]  ;;  %v286_v13 = vld [vmem:[%s810_s23 + $0x68] sm:$0xff]  ;;  %v287_v14 = vld [vmem:[%s810_s23 + $0x70] sm:$0xff] }
  0x14   : > { %309 = vst [vmem:[%s815_s26 + $0x20] sm:$0xff] %v277_v4  ;;  %v373_v15 = vld [vmem:[%s835_s29 + $0xe0] sm:$0xff]  ;;  %v375_v16 = vld [vmem:[%s835_s29 + $0xf0] sm:$0xff]  ;;  %v374_v17 = vld [vmem:[%s835_s29 + $0xe8] sm:$0xff] }
  0x15   : > { %310 = vst [vmem:[%s815_s26 + $0x28] sm:$0xff] %v278_v5  ;;  %v376_v18 = vld [vmem:[%s835_s29 + $0xf8] sm:$0xff]  ;;  %v391_v19 = vpack.c.bf16 %v375_v16, %v373_v15  ;;  %v369_v21 = vld [vmem:[%s835_s29 + $0xc0] sm:$0xff]  ;;  %v371_v22 = vld [vmem:[%s835_s29 + $0xd0] sm:$0xff] }
  0x16   : > { %311 = vst [vmem:[%s815_s26 + $0x30] sm:$0xff] %v279_v6  ;;  %v392_v20 = vpack.c.bf16 %v376_v18, %v374_v17  ;;  %v370_v23 = vld [vmem:[%s835_s29 + $0xc8] sm:$0xff]  ;;  %v288_v24 = vld [vmem:[%s810_s23 + $0x78] sm:$0xff]  ;;  %v289_v26 = vld [vmem:[%s810_s23 + $0x80] sm:$0xff]  ;;  %v389_v27 = vpack.c.bf16 %v371_v22, %v369_v21 }
  0x17   : > { %312 = vst [vmem:[%s815_s26 + $0x38] sm:$0xff] %v280_v7  ;;  %v372_v25 = vld [vmem:[%s835_s29 + $0xd8] sm:$0xff]  ;;  %465 = vmatpush.bf16.msra.mxu0 %v391_v19  ;;  %694 = vmatpush.bf16.msra.mxu2 %v391_v19  ;;  %v290_v28 = vld [vmem:[%s810_s23 + $0x88] sm:$0xff]  ;;  %v365_v30 = vld [vmem:[%s835_s29 + $0xa0] sm:$0xff] }
  0x18   : > { %313 = vst [vmem:[%s815_s26 + $0x40] sm:$0xff] %v281_v8  ;;  %494 = vmatpush.bf16.msra.mxu1 %v392_v20  ;;  %702 = vmatpush.bf16.msra.mxu3 %v392_v20  ;;  %v390_v29 = vpack.c.bf16 %v372_v25, %v370_v23  ;;  %v367_v31 = vld [vmem:[%s835_s29 + $0xb0] sm:$0xff]  ;;  %v366_v33 = vld [vmem:[%s835_s29 + $0xa8] sm:$0xff]  ;;  %v368_v34 = vld [vmem:[%s835_s29 + $0xb8] sm:$0xff] }
  0x19   : > { %314 = vst [vmem:[%s815_s26 + $0x48] sm:$0xff] %v282_v9  ;;  %v291_v32 = vld [vmem:[%s810_s23 + $0x90] sm:$0xff]  ;;  %v292_v36 = vld [vmem:[%s810_s23 + $0x98] sm:$0xff]  ;;  %v293_v37 = vld [vmem:[%s810_s23 + $0xa0] sm:$0xff]  ;;  %v387_v38 = vpack.c.bf16 %v367_v31, %v365_v30  ;;  %v388_v40 = vpack.c.bf16 %v368_v34, %v366_v33 }
  0x1a   : > { %315 = vst [vmem:[%s815_s26 + $0x50] sm:$0xff] %v283_v10  ;;  %v294_v39 = vld [vmem:[%s810_s23 + $0xa8] sm:$0xff]  ;;  %v361_v41 = vld [vmem:[%s835_s29 + $0x80] sm:$0xff]  ;;  %v363_v42 = vld [vmem:[%s835_s29 + $0x90] sm:$0xff] }
  0x1b   : > { %316 = vst [vmem:[%s815_s26 + $0x58] sm:$0xff] %v284_v11  ;;  %466 = vmatpush.bf16.msra.mxu0 %v389_v27  ;;  %695 = vmatpush.bf16.msra.mxu2 %v389_v27  ;;  %v295_v43 = vld [vmem:[%s810_s23 + $0xb0] sm:$0xff]  ;;  %v362_v44 = vld [vmem:[%s835_s29 + $0x88] sm:$0xff]  ;;  %v364_v45 = vld [vmem:[%s835_s29 + $0x98] sm:$0xff]  ;;  %v385_v48 = vpack.c.bf16 %v363_v42, %v361_v41 }
  0x1c   : > { %317 = vst [vmem:[%s815_s26 + $0x60] sm:$0xff] %v285_v12  ;;  %495 = vmatpush.bf16.msra.mxu1 %v390_v29  ;;  %703 = vmatpush.bf16.msra.mxu3 %v390_v29  ;;  %v296_v46 = vld [vmem:[%s810_s23 + $0xb8] sm:$0xff]  ;;  %v297_v47 = vld [vmem:[%s810_s23 + $0xc0] sm:$0xff]  ;;  %v298_v51 = vld [vmem:[%s810_s23 + $0xc8] sm:$0xff]  ;;  %v386_v52 = vpack.c.bf16 %v364_v45, %v362_v44 }
  0x1d   : > { %318 = vst [vmem:[%s815_s26 + $0x68] sm:$0xff] %v286_v13  ;;  %v357_v53 = vld [vmem:[%s835_s29 + $0x60] sm:$0xff]  ;;  %v359_v54 = vld [vmem:[%s835_s29 + $0x70] sm:$0xff]  ;;  %v358_v56 = vld [vmem:[%s835_s29 + $0x68] sm:$0xff] }
  0x1e   : > { %319 = vst [vmem:[%s815_s26 + $0x70] sm:$0xff] %v287_v14  ;;  %v299_v55 = vld [vmem:[%s810_s23 + $0xd0] sm:$0xff]  ;;  %v360_v57 = vld [vmem:[%s835_s29 + $0x78] sm:$0xff]  ;;  %v301_v59 = vld [vmem:[%s810_s23 + $0xe0] sm:$0xff]  ;;  %v383_v60 = vpack.c.bf16 %v359_v54, %v357_v53 }
  0x1f   : > { %320 = vst [vmem:[%s815_s26 + $0x78] sm:$0xff] %v288_v24  ;;  %467 = vmatpush.bf16.msra.mxu0 %v387_v38  ;;  %696 = vmatpush.bf16.msra.mxu2 %v387_v38  ;;  %v300_v58 = vld [vmem:[%s810_s23 + $0xd8] sm:$0xff]  ;;  %v302_v61 = vld [vmem:[%s810_s23 + $0xe8] sm:$0xff]  ;;  %v384_v62 = vpack.c.bf16 %v360_v57, %v358_v56  ;;  %v353_v63 = vld [vmem:[%s835_s29 + $0x40] sm:$0xff] }
  0x20   : > { %321 = vst [vmem:[%s815_s26 + $0x80] sm:$0xff] %v289_v26  ;;  %496 = vmatpush.bf16.msra.mxu1 %v388_v40  ;;  %704 = vmatpush.bf16.msra.mxu3 %v388_v40  ;;  %v355_v0 = vld [vmem:[%s835_s29 + $0x50] sm:$0xff]  ;;  %v354_v2 = vld [vmem:[%s835_s29 + $0x48] sm:$0xff]  ;;  %v356_v3 = vld [vmem:[%s835_s29 + $0x58] sm:$0xff] }
  0x21   : > { %322 = vst [vmem:[%s815_s26 + $0x88] sm:$0xff] %v290_v28  ;;  %v303_v1 = vld [vmem:[%s810_s23 + $0xf0] sm:$0xff]  ;;  %v304_v4 = vld [vmem:[%s810_s23 + $0xf8] sm:$0xff]  ;;  %v381_v5 = vpack.c.bf16 %v355_v0, %v353_v63  ;;  %v394_v7 = vld [vmem:[%s982_s3 + $0x8] sm:$0xff]  ;;  %v382_v8 = vpack.c.bf16 %v356_v3, %v354_v2 }
  0x22   : > { %323 = vst [vmem:[%s815_s26 + $0x90] sm:$0xff] %v291_v32  ;;  %v396_v6 = vld [vmem:[%s982_s3 + $0x18] sm:$0xff]  ;;  %v349_v9 = vld [vmem:[%s835_s29 + $0x20] sm:$0xff]  ;;  %v351_v10 = vld [vmem:[%s835_s29 + $0x30] sm:$0xff]  ;;  %408 = vperm.xlu0 %736, %v394_v7  }
  0x23   : > { %324 = vst [vmem:[%s815_s26 + $0x98] sm:$0xff] %v292_v36  ;;  %468 = vmatpush.bf16.msra.mxu0 %v385_v48  ;;  %697 = vmatpush.bf16.msra.mxu2 %v385_v48  ;;  %v397_v11 = vld [vmem:[%s982_s3 + $0x20] sm:$0xff]  ;;  %v350_v12 = vld [vmem:[%s835_s29 + $0x28] sm:$0xff]  ;;  %v352_v13 = vld [vmem:[%s835_s29 + $0x38] sm:$0xff]  ;;  %v379_v14 = vpack.c.bf16 %v351_v10, %v349_v9 }
  0x24   : > { %325 = vst [vmem:[%s815_s26 + $0xa0] sm:$0xff] %v293_v37  ;;  %497 = vmatpush.bf16.msra.mxu1 %v386_v52  ;;  %705 = vmatpush.bf16.msra.mxu3 %v386_v52  ;;  %v380_v15 = vpack.c.bf16 %v352_v13, %v350_v12  ;;  %v345_v16 = vld [vmem:[%s835_s29] sm:$0xff]  ;;  %v347_v17 = vld [vmem:[%s835_s29 + $0x10] sm:$0xff]  ;;  %v346_v18 = vld [vmem:[%s835_s29 + $0x8] sm:$0xff] }
  0x25   : > { %326 = vst [vmem:[%s815_s26 + $0xa8] sm:$0xff] %v294_v39  ;;  %418 = vperm.xlu1 %737, %v396_v6   ;;  %423 = vperm.xlu2 %738, %v397_v11   ;;  %v348_v19 = vld [vmem:[%s835_s29 + $0x18] sm:$0xff]  ;;  %v399_v21 = vld [vmem:[%s982_s3 + $0x30] sm:$0xff]  ;;  %v377_v22 = vpack.c.bf16 %v347_v17, %v345_v16  ;;  %v398_v23 = vld [vmem:[%s982_s3 + $0x28] sm:$0xff] }
  0x26   : > { %327 = vst [vmem:[%s815_s26 + $0xb0] sm:$0xff] %v295_v43  ;;  %v400_v20 = vld [vmem:[%s982_s3 + $0x38] sm:$0xff]  ;;  %v378_v24 = vpack.c.bf16 %v348_v19, %v346_v18  ;;  %v690_v25 = vld [vmem:[%s981_s2] sm:$0xff]  ;;  %v692_v26 = vld [vmem:[%s981_s2 + $0x10] sm:$0xff] }
  0x27   : > { %328 = vst [vmem:[%s815_s26 + $0xb8] sm:$0xff] %v296_v46  ;;  %469 = vmatpush.bf16.msra.mxu0 %v383_v60  ;;  %698 = vmatpush.bf16.msra.mxu2 %v383_v60  ;;  %v691_v27 = vld [vmem:[%s981_s2 + $0x8] sm:$0xff]  ;;  %v693_v28 = vld [vmem:[%s981_s2 + $0x18] sm:$0xff] }
  0x28   : > { %329 = vst [vmem:[%s815_s26 + $0xc0] sm:$0xff] %v297_v47  ;;  %498 = vmatpush.bf16.msra.mxu1 %v384_v62  ;;  %706 = vmatpush.bf16.msra.mxu3 %v384_v62 }
  0x29   : > { %330 = vst [vmem:[%s815_s26 + $0xc8] sm:$0xff] %v298_v51 }
  0x2a   : > { %331 = vst [vmem:[%s815_s26 + $0xd0] sm:$0xff] %v299_v55  ;;  %433 = vperm.xlu0 %736, %v399_v21  }
  0x2b   : > { %332 = vst [vmem:[%s815_s26 + $0xd8] sm:$0xff] %v300_v58  ;;  %470 = vmatpush.bf16.msra.mxu0 %v381_v5  ;;  %699 = vmatpush.bf16.msra.mxu2 %v381_v5 }
  0x2c   : > { %333 = vst [vmem:[%s815_s26 + $0xe0] sm:$0xff] %v301_v59  ;;  %499 = vmatpush.bf16.msra.mxu1 %v382_v8  ;;  %707 = vmatpush.bf16.msra.mxu3 %v382_v8 }
  0x2d   : > { %334 = vst [vmem:[%s815_s26 + $0xe8] sm:$0xff] %v302_v61  ;;  %438 = vperm.xlu1 %737, %v400_v20   ;;  %428 = vperm.xlu2 %738, %v398_v23  }
  0x2e   : > { %335 = vst [vmem:[%s815_s26 + $0xf0] sm:$0xff] %v303_v1 }
  0x2f   : > { %336 = vst [vmem:[%s815_s26 + $0xf8] sm:$0xff] %v304_v4  ;;  %471 = vmatpush.bf16.msra.mxu0 %v379_v14  ;;  %700 = vmatpush.bf16.msra.mxu2 %v379_v14 }
  0x30   : > { %500 = vmatpush.bf16.msra.mxu1 %v380_v15  ;;  %708 = vmatpush.bf16.msra.mxu3 %v380_v15 }
  0x33   : > { %472 = vmatpush.bf16.msra.mxu0 %v377_v22  ;;  %701 = vmatpush.bf16.msra.mxu2 %v377_v22 }
  0x34   : > { %501 = vmatpush.bf16.msra.mxu1 %v378_v24  ;;  %709 = vmatpush.bf16.msra.mxu3 %v378_v24 }
  0x36   : > { %473 = vmatmul.bf16.vlgmr.msra.gmra.mxu0 %v690_v25  ;;  %483 = vmatmul.bf16.vlgmr.msra.gmra.mxu2 %v692_v26 }
  0x37   : > { %502 = vmatmul.bf16.vlgmr.msra.gmra.mxu1 %v690_v25  ;;  %512 = vmatmul.bf16.vlgmr.msra.gmra.mxu3 %v692_v26 }
  0x46   : > { %478 = vmatmul.bf16.gmra.mxu0 %v691_v27  ;;  %488 = vmatmul.bf16.gmra.mxu2 %v693_v28 }
  0x47   : > { %507 = vmatmul.bf16.gmra.mxu1 %v691_v27  ;;  %517 = vmatmul.bf16.gmra.mxu3 %v693_v28 }
  0x7f   : > { %v424_v34 = vpop.permute.xlu2 %423 }
  0x80   : > { %v414_v46 = vpop.permute.xlu1 %413 }
  0x81   : > { %v404_v29 = vpop.permute.xlu0 %403 }
  0x87   : > { %v429_v51 = vpop.permute.xlu2 %428 }
  0x94   : > { %v409_v40 = vpop.permute.xlu0 %408 }
  0x97   : > { %v419_v63 = vpop.permute.xlu1 %418 }
  0x9c   : > { %v434_v1 = vpop.permute.xlu0 %433 }
  0x9f   : > { %v439_v14 = vpop.permute.xlu1 %438 }
  0xb3   : > { %v474_v30 = vpop.f32.mrf.mxu0 }
  0xb4   : > { %v475_v31 = vadd.f32 %v474_v30, %v404_v29  ;;  %v503_v32 = vpop.f32.mrf.mxu1 }
  0xb5   : > { %v504_v33 = vadd.f32 %v503_v32, %v404_v29 }
  0xb6   : > { %v523_v35 = vmax.f32 %v475_v31, 0.0 }
  0xb7   : > { %v524_v36 = vmax.f32 %v504_v33, 0.0 }
  0xb8   : > { %539 = vst [vmem:[%s815_s26 + $0x100] sm:$0xff] %v523_v35 }
  0xb9   : > { %540 = vst [vmem:[%s815_s26 + $0x108] sm:$0xff] %v524_v36  ;;  %v484_v37 = vpop.f32.mrf.mxu2 }
  0xba   : > { %v485_v38 = vadd.f32 %v484_v37, %v424_v34  ;;  %v513_v39 = vpop.f32.mrf.mxu3 }
  0xbb   : > { %v514_v41 = vadd.f32 %v513_v39, %v424_v34  ;;  %v476_v42 = vpop.f32.mrf.mxu0 }
  0xbc   : > { %v531_v43 = vmax.f32 %v485_v38, 0.0  ;;  %v477_v44 = vadd.f32 %v476_v42, %v409_v40  ;;  %v505_v45 = vpop.f32.mrf.mxu1 }
  0xbd   : > { %v532_v47 = vmax.f32 %v514_v41, 0.0  ;;  %v506_v48 = vadd.f32 %v505_v45, %v409_v40 }
  0xbe   : > { %547 = vst [vmem:[%s815_s26 + $0x140] sm:$0xff] %v531_v43  ;;  %v525_v49 = vmax.f32 %v477_v44, 0.0 }
  0xbf   : > { %548 = vst [vmem:[%s815_s26 + $0x148] sm:$0xff] %v532_v47  ;;  %v526_v50 = vmax.f32 %v506_v48, 0.0 }
  0xc0   : > { %541 = vst [vmem:[%s815_s26 + $0x110] sm:$0xff] %v525_v49 }
  0xc1   : > { %542 = vst [vmem:[%s815_s26 + $0x118] sm:$0xff] %v526_v50  ;;  %v486_v52 = vpop.f32.mrf.mxu2 }
  0xc2   : > { %v487_v53 = vadd.f32 %v486_v52, %v429_v51  ;;  %v515_v54 = vpop.f32.mrf.mxu3 }
  0xc3   : > { %v516_v55 = vadd.f32 %v515_v54, %v429_v51  ;;  %v479_v56 = vpop.f32.mrf.mxu0 }
  0xc4   : > { %v533_v57 = vmax.f32 %v487_v53, 0.0  ;;  %v480_v58 = vadd.f32 %v479_v56, %v414_v46  ;;  %v508_v59 = vpop.f32.mrf.mxu1 }
  0xc5   : > { %v534_v60 = vmax.f32 %v516_v55, 0.0  ;;  %v509_v61 = vadd.f32 %v508_v59, %v414_v46 }
  0xc6   : > { %549 = vst [vmem:[%s815_s26 + $0x150] sm:$0xff] %v533_v57  ;;  %v527_v62 = vmax.f32 %v480_v58, 0.0 }
  0xc7   : > { %550 = vst [vmem:[%s815_s26 + $0x158] sm:$0xff] %v534_v60  ;;  %v528_v0 = vmax.f32 %v509_v61, 0.0 }
  0xc8   : > { %543 = vst [vmem:[%s815_s26 + $0x120] sm:$0xff] %v527_v62 }
  0xc9   : > { %544 = vst [vmem:[%s815_s26 + $0x128] sm:$0xff] %v528_v0  ;;  %v489_v2 = vpop.f32.mrf.mxu2 }
  0xca   : > { %v490_v3 = vadd.f32 %v489_v2, %v434_v1  ;;  %v518_v4 = vpop.f32.mrf.mxu3 }
  0xcb   : > { %v519_v5 = vadd.f32 %v518_v4, %v434_v1  ;;  %v481_v6 = vpop.f32.mrf.mxu0 }
  0xcc   : > { %v535_v7 = vmax.f32 %v490_v3, 0.0  ;;  %v482_v8 = vadd.f32 %v481_v6, %v419_v63  ;;  %v510_v9 = vpop.f32.mrf.mxu1 }
  0xcd   : > { %v536_v10 = vmax.f32 %v519_v5, 0.0  ;;  %v511_v11 = vadd.f32 %v510_v9, %v419_v63 }
  0xce   : > { %551 = vst [vmem:[%s815_s26 + $0x160] sm:$0xff] %v535_v7  ;;  %v529_v12 = vmax.f32 %v482_v8, 0.0 }
  0xcf   : > { %552 = vst [vmem:[%s815_s26 + $0x168] sm:$0xff] %v536_v10  ;;  %v530_v13 = vmax.f32 %v511_v11, 0.0 }
  0xd0   : > { %545 = vst [vmem:[%s815_s26 + $0x130] sm:$0xff] %v529_v12 }
  0xd1   : > { %546 = vst [vmem:[%s815_s26 + $0x138] sm:$0xff] %v530_v13  ;;  %v491_v15 = vpop.f32.mrf.mxu2 }
  0xd2   : > { %v492_v16 = vadd.f32 %v491_v15, %v439_v14  ;;  %v520_v17 = vpop.f32.mrf.mxu3 }
  0xd3   : > { %v521_v18 = vadd.f32 %v520_v17, %v439_v14 }
  0xd4   : > { %v537_v19 = vmax.f32 %v492_v16, 0.0 }
  0xd5   : > { %v538_v20 = vmax.f32 %v521_v18, 0.0 }
  0xd6   : > { %553 = vst [vmem:[%s815_s26 + $0x170] sm:$0xff] %v537_v19 }
  0xd7   : > { %554 = vst [vmem:[%s815_s26 + $0x178] sm:$0xff] %v538_v20 }
  0xd8 PF: > { %s14_s17 = sadd.s32 1, %s761_s17   ;;  %s984_s15 = smov %s757_s16 }
  0xd9   : > { %p11_p5 = scmp.ge.s32.totalorder %s14_s17, 4   ;;  %s985_s16 = smov %s987_s18 }
  0xdb   :  { %13 = sbr.rel (!%p11_p5) target bundleno = 2 (0x2), region = 69 }

</bundles_post_ra>
